<compile_context>
chip_gen: v7x
topology: tpu7x:2x2x1
jax: 0.10.0
libtpu: 0.0.40
codegen_flags: <defaults>
</compile_context>

<pallas_src>
import functools

import jax
import jax.numpy as jnp
from jax.experimental import pallas as pl
from jax.experimental.pallas import tpu as pltpu


def _round_up(x, m):
    return ((x + m - 1) // m) * m


def _tensorcore_count():
    """2 TensorCores per chip on v7x, 1 on v5e/v6e."""
    try:
        kind = jax.devices()[0].device_kind.lower()
    except Exception:
        return 1
    return 2 if "v7" in kind else 1


def _focal_loss_kernel(logits_ref, tgt_ref, out_ref, *, alpha, gamma,
                       ignore_index, tiles_per_core, tile_extent, valid_extent):
    c = pl.program_id(0)   # core split     (CORE_PARALLEL on 2-TC chips)
    b = pl.program_id(1)   # batch blocks   (arbitrary; size 1 when batch is folded)
    j = pl.program_id(2)   # spatial tiles  (arbitrary)

    # init this core's lane-parallel accumulator (output block stays resident
    # across the inner reduction axes -> accumulator pattern)
    @pl.when((b == 0) & (j == 0))
    def _():
        out_ref[...] = jnp.zeros_like(out_ref)

    x = logits_ref[...].astype(jnp.float32)          # (Nb, C, *spatial)
    t = tgt_ref[...]                                 # (Nb, *spatial) int32
    t = jnp.expand_dims(t, 1)                        # (Nb, 1, *spatial)

    # numerically stable log-sum-exp over the class axis (axis=1)
    m = jnp.max(x, axis=1, keepdims=True)
    lse = jnp.log(jnp.sum(jnp.exp(x - m), axis=1, keepdims=True)) + m

    # target-class logit via one-hot compare (no dynamic gather on TPU)
    cls = jax.lax.broadcasted_iota(jnp.int32, x.shape, dimension=1)
    tgt_logit = jnp.sum(jnp.where(cls == t, x, 0.0), axis=1, keepdims=True)

    # validity: inside the real spatial extent (tail tiles / duplicated clamped
    # tiles from the core split) and not the ignore_index class
    tile_global = c * tiles_per_core + j
    pos = jax.lax.broadcasted_iota(jnp.int32, t.shape, dimension=2)
    pos = tile_global * tile_extent + pos
    valid = (pos < valid_extent) & (t != ignore_index)

    # F.cross_entropy(..., reduction='none') gives 0 at ignored positions
    ce = jnp.where(valid, lse - tgt_logit, 0.0)

    # focal weighting, specialized on the static gamma (gamma >= 0 assumed, as in
    # the module's intended use; ce==0 at masked positions => focal==0 everywhere)
    if gamma == 0.0:
        focal = alpha * ce
    else:
        one_m_pt = 1.0 - jnp.exp(-ce)
        if float(gamma).is_integer() and 0 < gamma <= 8:
            w = one_m_pt
            for _ in range(int(gamma) - 1):
                w = w * one_m_pt
        else:
            w = jnp.power(one_m_pt, gamma)
        focal = alpha * w * ce

    # fold the batch dim (leading, cheap elementwise adds) into the lane-parallel
    # per-core accumulator
    out_ref[...] += jnp.sum(focal, axis=0).reshape(out_ref.shape)


def focal_loss(inputs, targets, *, alpha=1.0, gamma=0.0, size_average=True,
               ignore_index=255, num_cores=None, block_budget_bytes=None):
    """inputs: (N, C, H, W) float logits; targets: (N, H, W) int class ids."""
    N, C, H, W = inputs.shape
    S = H * W
    itemsize = jnp.dtype(inputs.dtype).itemsize
    # ~4 MiB logits blocks: double-buffered inputs + accumulator stay well inside
    # v7x's 64 MiB VMEM, and blocks this size already reach ~roofline DMA on
    # v5e/v6e (diminishing returns past ~2-4 MiB).
    budget = int(block_budget_bytes) if block_budget_bytes else 4 * 1024 * 1024

    tc = _tensorcore_count()
    req_cores = tc if num_cores is None else int(num_cores)

    if (W % 128 == 0) and (H % 8 == 0):
        # ---- NCHW-native path: no relayout copy, class axis leading (VPU reduce)
        nb = N if N * C * 8 * W * itemsize <= budget else 1
        tile_h = max(8, (budget // (nb * C * W * itemsize)) // 8 * 8)
        tile_h = min(tile_h, H)
        s_tiles = pl.cdiv(H, tile_h)
        ncores = max(1, min(req_cores, s_tiles))
        tpc = pl.cdiv(s_tiles, ncores)

        def lg_idx(c, b, j):
            return (b, 0, jnp.minimum(c * tpc + j, s_tiles - 1), 0)

        def tg_idx(c, b, j):
            return (b, jnp.minimum(c * tpc + j, s_tiles - 1), 0)

        in_specs = [pl.BlockSpec((nb, C, tile_h, W), lg_idx),
                    pl.BlockSpec((nb, tile_h, W), tg_idx)]
        out_sds = jax.ShapeDtypeStruct((ncores, tile_h, W), jnp.float32)
        out_spec = pl.BlockSpec((1, tile_h, W), lambda c, b, j: (c, 0, 0))
        args = (inputs, targets.astype(jnp.int32))
        tile_extent, valid_extent = tile_h, H
        lg_block = nb * C * tile_h * W * itemsize
        tg_block = nb * tile_h * W * 4
        out_bytes = ncores * tile_h * W * 4
    else:
        # ---- fallback: merge spatial dims (one relayout copy); pixels on lanes
        logits = inputs.reshape(N, C, S)
        tgts = targets.reshape(N, S).astype(jnp.int32)    # 2-D: no 8x sublane pad
        nb = N                                            # fold full batch in block
        tile_pix = max(128, (budget // (nb * C * itemsize)) // 128 * 128)
        tile_pix = min(tile_pix, _round_up(S, 128))
        s_tiles = pl.cdiv(S, tile_pix)
        ncores = max(1, min(req_cores, s_tiles))
        tpc = pl.cdiv(s_tiles, ncores)

        def lg_idx(c, b, j):
            return (b, 0, jnp.minimum(c * tpc + j, s_tiles - 1))

        def tg_idx(c, b, j):
            return (b, jnp.minimum(c * tpc + j, s_tiles - 1))

        in_specs = [pl.BlockSpec((nb, C, tile_pix), lg_idx),
                    pl.BlockSpec((nb, tile_pix), tg_idx)]
        out_sds = jax.ShapeDtypeStruct((ncores, 1, tile_pix), jnp.float32)
        out_spec = pl.BlockSpec((1, 1, tile_pix), lambda c, b, j: (c, 0, 0))
        args = (logits, tgts)
        tile_extent, valid_extent = tile_pix, S
        lg_block = nb * C * tile_pix * itemsize
        tg_block = nb * tile_pix * 4
        out_bytes = ncores * tile_pix * 4

    n_b = N // nb
    # Only claim a real 2-TC split where the hardware has 2 TensorCores.
    core_sem = pltpu.CORE_PARALLEL if (ncores > 1 and tc > 1) else pltpu.ARBITRARY

    # double-buffered inputs + resident accumulator + margin (fits v7x 64 MiB VMEM)
    vmem_need = 2 * (lg_block + tg_block) + 2 * out_bytes + (4 << 20)
    vmem_limit = int(min(max(vmem_need, 16 << 20), 48 << 20))

    kernel = functools.partial(
        _focal_loss_kernel, alpha=float(alpha), gamma=float(gamma),
        ignore_index=int(ignore_index), tiles_per_core=tpc,
        tile_extent=tile_extent, valid_extent=valid_extent)

    partials = pl.pallas_call(
        kernel,
        out_shape=out_sds,
        grid_spec=pltpu.PrefetchScalarGridSpec(
            num_scalar_prefetch=0,
            grid=(ncores, n_b, tpc),
            in_specs=in_specs,
            out_specs=out_spec),
        compiler_params=pltpu.CompilerParams(
            dimension_semantics=(core_sem, pltpu.ARBITRARY, pltpu.ARBITRARY),
            vmem_limit_bytes=vmem_limit),
    )(*args)

    total = jnp.sum(partials)
    if size_average:
        return total / jnp.float32(N * S)   # torch .mean() divides by ALL pixels
    return total


def _focal_loss_ref(inputs, targets, *, alpha=1.0, gamma=0.0, size_average=True,
                    ignore_index=255):
    # pure-JAX reference for correctness checking
    N, C, H, W = inputs.shape
    logits = jnp.transpose(inputs, (0, 2, 3, 1)).reshape(-1, C).astype(jnp.float32)
    t = targets.reshape(-1).astype(jnp.int32)
    valid = t != ignore_index
    t_safe = jnp.where(valid, t, 0)
    logp = jax.nn.log_softmax(logits, axis=-1)
    ce = -jnp.take_along_axis(logp, t_safe[:, None], axis=-1)[:, 0]
    ce = jnp.where(valid, ce, 0.0)
    pt = jnp.exp(-ce)
    fl = alpha * jnp.power(1.0 - pt, gamma) * ce
    fl = jnp.where(valid, fl, 0.0)
    return fl.mean() if size_average else fl.sum()


if __name__ == "__main__":
    key = jax.random.PRNGKey(0)

    # --- config 1: module-default-ish small shapes (fallback (N,C,S) path) -----
    k1, k2, k3 = jax.random.split(key, 3)
    N, C, H, W = 2, 4, 16, 16
    x = jax.random.normal(k1, (N, C, H, W), dtype=jnp.float32)
    tgt = jax.random.randint(k2, (N, H, W), 0, C, dtype=jnp.int32)
    tgt = jnp.where(jax.random.bernoulli(k3, 0.1, (N, H, W)), 255, tgt)

    out_default = focal_loss(x, tgt, alpha=1.0, gamma=0.0, size_average=True)
    out_focal = focal_loss(x, tgt, alpha=0.25, gamma=2.0, size_average=True)
    out_sum = focal_loss(x, tgt, alpha=0.25, gamma=2.0, size_average=False)
    jax.block_until_ready((out_default, out_focal, out_sum))

    assert jnp.allclose(out_default, _focal_loss_ref(x, tgt, alpha=1.0, gamma=0.0),
                        rtol=1e-5, atol=1e-5)
    assert jnp.allclose(out_focal, _focal_loss_ref(x, tgt, alpha=0.25, gamma=2.0),
                        rtol=1e-5, atol=1e-5)
    assert jnp.allclose(out_sum,
                        _focal_loss_ref(x, tgt, alpha=0.25, gamma=2.0, size_average=False),
                        rtol=1e-5, atol=1e-5)

    # --- config 2: fallback path, multi-tile grid, forced 2-way core split,
    #     partial final tile and duplicated clamped tile (all masked in-kernel) --
    k4, k5, k6 = jax.random.split(jax.random.PRNGKey(1), 3)
    N2, C2, H2, W2 = 2, 4, 48, 48          # S = 2304 = 4*512 + 256
    x2 = jax.random.normal(k4, (N2, C2, H2, W2), dtype=jnp.float32)
    tgt2 = jax.random.randint(k5, (N2, H2, W2), 0, C2, dtype=jnp.int32)
    tgt2 = jnp.where(jax.random.bernoulli(k6, 0.1, (N2, H2, W2)), 255, tgt2)

    out2 = focal_loss(x2, tgt2, alpha=0.5, gamma=2.0, size_average=True,
                      num_cores=2, block_budget_bytes=16384)   # -> tile_pix=512
    jax.block_until_ready(out2)
    assert jnp.allclose(out2, _focal_loss_ref(x2, tgt2, alpha=0.5, gamma=2.0),
                        rtol=1e-5, atol=1e-5)

    # --- config 3: NCHW-native path (W%128==0, H%8==0), folded batch block,
    #     H-tile overshoot masking (H=24 with TILE_H=16) ------------------------
    k7, k8, k9 = jax.random.split(jax.random.PRNGKey(2), 3)
    N3, C3, H3, W3 = 2, 4, 24, 128
    x3 = jax.random.normal(k7, (N3, C3, H3, W3), dtype=jnp.float32)
    tgt3 = jax.random.randint(k8, (N3, H3, W3), 0, C3, dtype=jnp.int32)
    tgt3 = jnp.where(jax.random.bernoulli(k9, 0.1, (N3, H3, W3)), 255, tgt3)

    out3 = focal_loss(x3, tgt3, alpha=0.25, gamma=2.0, size_average=True,
                      num_cores=2, block_budget_bytes=70000)   # -> TILE_H=16
    out3s = focal_loss(x3, tgt3, alpha=1.0, gamma=0.0, size_average=False)
    jax.block_until_ready((out3, out3s))
    assert jnp.allclose(out3, _focal_loss_ref(x3, tgt3, alpha=0.25, gamma=2.0),
                        rtol=1e-5, atol=1e-5)
    assert jnp.allclose(out3s,
                        _focal_loss_ref(x3, tgt3, alpha=1.0, gamma=0.0, size_average=False),
                        rtol=1e-5, atol=1e-5)

    print("KERNEL_OK")
</pallas_src>

<mosaic_0001>
module attributes {stable_mosaic.version = 11 : i64} {
  func.func @_focal_loss_kernel(%arg0: i32, %arg1: i32, %arg2: i32, %arg3: memref<2x4x256xf32, #tpu.memory_space<vmem>>, %arg4: memref<2x256xi32, #tpu.memory_space<vmem>>, %arg5: memref<1x1x256xf32, #tpu.memory_space<vmem>>) attributes {dimension_semantics = [#tpu.dimension_semantics<arbitrary>, #tpu.dimension_semantics<arbitrary>, #tpu.dimension_semantics<arbitrary>], iteration_bounds = array<i64: 1, 1, 1>, scalar_prefetch = 0 : i64, scratch_operands = 0 : i64, tpu.core_type = #tpu.core_type<tc>, window_params = [{transform_indices = @transform_0, window_bounds = array<i64: 2, 4, 256>}, {transform_indices = @transform_1, window_bounds = array<i64: 2, 256>}, {transform_indices = @transform_2, window_bounds = array<i64: 1, 1, 256>}]} {
    %c0_i32 = arith.constant 0 : i32
    %0 = arith.cmpi eq, %arg1, %c0_i32 : i32
    %c0_i32_0 = arith.constant 0 : i32
    %1 = arith.cmpi eq, %arg2, %c0_i32_0 : i32
    %2 = arith.andi %0, %1 : i1
    %3 = arith.extui %2 : i1 to i32
    %c0_i32_1 = arith.constant 0 : i32
    %4 = arith.cmpi ne, %3, %c0_i32_1 : i32
    scf.if %4 {
      %cst_19 = arith.constant 0.000000e+00 : f32
      %45 = vector.broadcast %cst_19 : f32 to vector<1x1x256xf32>
      %c0_20 = arith.constant 0 : index
      %c0_21 = arith.constant 0 : index
      %c0_22 = arith.constant 0 : index
      %46 = vector.load %arg5[%c0_20, %c0_21, %c0_22] : memref<1x1x256xf32, #tpu.memory_space<vmem>>, vector<1x1x256xf32>
      tpu.vector_store %arg5[%c0_20, %c0_21, %c0_22], %45 {strides = array<i32>} : memref<1x1x256xf32, #tpu.memory_space<vmem>>, vector<1x1x256xf32>,
    } else {
    }
    %c0 = arith.constant 0 : index
    %c0_2 = arith.constant 0 : index
    %c0_3 = arith.constant 0 : index
    %5 = vector.load %arg3[%c0, %c0_2, %c0_3] : memref<2x4x256xf32, #tpu.memory_space<vmem>>, vector<2x4x256xf32>
    %c0_4 = arith.constant 0 : index
    %c0_5 = arith.constant 0 : index
    %6 = vector.load %arg4[%c0_4, %c0_5] : memref<2x256xi32, #tpu.memory_space<vmem>>, vector<2x256xi32>
    %7 = vector.shape_cast %6 : vector<2x256xi32> to vector<2x1x256xi32>
    %cst = arith.constant dense<0xFF800000> : vector<2x256xf32>
    %8 = vector.multi_reduction <maximumf>, %5, %cst [1] : vector<2x4x256xf32> to vector<2x256xf32>
    %9 = vector.shape_cast %8 : vector<2x256xf32> to vector<2x1x256xf32>
    %10 = vector.broadcast %9 : vector<2x1x256xf32> to vector<2x4x256xf32>
    %11 = arith.subf %5, %10 : vector<2x4x256xf32>
    %12 = math.exp %11 : vector<2x4x256xf32>
    %cst_6 = arith.constant dense<0.000000e+00> : vector<2x256xf32>
    %13 = vector.multi_reduction <add>, %12, %cst_6 [1] : vector<2x4x256xf32> to vector<2x256xf32>
    %14 = vector.shape_cast %13 : vector<2x256xf32> to vector<2x1x256xf32>
    %15 = math.log %14 : vector<2x1x256xf32>
    %16 = arith.addf %15, %9 : vector<2x1x256xf32>
    %17 = tpu.iota {dimensions = array<i32: 1>} : vector<2x4x256xi32>
    %18 = vector.broadcast %7 : vector<2x1x256xi32> to vector<2x4x256xi32>
    %19 = arith.cmpi eq, %17, %18 : vector<2x4x256xi32>
    %cst_7 = arith.constant 0.000000e+00 : f32
    %20 = vector.broadcast %cst_7 : f32 to vector<2x4x256xf32>
    %21 = arith.select %19, %5, %20 : vector<2x4x256xi1>, vector<2x4x256xf32>
    %cst_8 = arith.constant dense<0.000000e+00> : vector<2x256xf32>
    %22 = vector.multi_reduction <add>, %21, %cst_8 [1] : vector<2x4x256xf32> to vector<2x256xf32>
    %23 = vector.shape_cast %22 : vector<2x256xf32> to vector<2x1x256xf32>
    %c1_i32 = arith.constant 1 : i32
    %24 = arith.muli %arg0, %c1_i32 : i32
    %25 = arith.addi %24, %arg2 : i32
    %26 = tpu.iota {dimensions = array<i32: 2>} : vector<2x1x256xi32>
    %c256_i32 = arith.constant 256 : i32
    %27 = arith.muli %25, %c256_i32 : i32
    %28 = vector.broadcast %27 : i32 to vector<2x1x256xi32>
    %29 = arith.addi %28, %26 : vector<2x1x256xi32>
    %c256_i32_9 = arith.constant 256 : i32
    %30 = vector.broadcast %c256_i32_9 : i32 to vector<2x1x256xi32>
    %31 = arith.cmpi slt, %29, %30 : vector<2x1x256xi32>
    %c255_i32 = arith.constant 255 : i32
    %32 = vector.broadcast %c255_i32 : i32 to vector<2x1x256xi32>
    %33 = arith.cmpi ne, %7, %32 : vector<2x1x256xi32>
    %34 = arith.andi %31, %33 : vector<2x1x256xi1>
    %35 = arith.subf %16, %23 : vector<2x1x256xf32>
    %cst_10 = arith.constant 0.000000e+00 : f32
    %36 = vector.broadcast %cst_10 : f32 to vector<2x1x256xf32>
    %37 = arith.select %34, %35, %36 : vector<2x1x256xi1>, vector<2x1x256xf32>
    %cst_11 = arith.constant 1.000000e+00 : f32
    %38 = vector.broadcast %cst_11 : f32 to vector<2x1x256xf32>
    %39 = arith.mulf %38, %37 : vector<2x1x256xf32>
    %c0_12 = arith.constant 0 : index
    %c0_13 = arith.constant 0 : index
    %c0_14 = arith.constant 0 : index
    %40 = vector.load %arg5[%c0_12, %c0_13, %c0_14] : memref<1x1x256xf32, #tpu.memory_space<vmem>>, vector<1x1x256xf32>
    %cst_15 = arith.constant dense<0.000000e+00> : vector<1x256xf32>
    %41 = vector.multi_reduction <add>, %39, %cst_15 [0] : vector<2x1x256xf32> to vector<1x256xf32>
    %42 = vector.shape_cast %41 : vector<1x256xf32> to vector<1x1x256xf32>
    %43 = arith.addf %40, %42 : vector<1x1x256xf32>
    %c0_16 = arith.constant 0 : index
    %c0_17 = arith.constant 0 : index
    %c0_18 = arith.constant 0 : index
    %44 = vector.load %arg5[%c0_16, %c0_17, %c0_18] : memref<1x1x256xf32, #tpu.memory_space<vmem>>, vector<1x1x256xf32>
    tpu.vector_store %arg5[%c0_16, %c0_17, %c0_18], %43 {strides = array<i32>} : memref<1x1x256xf32, #tpu.memory_space<vmem>>, vector<1x1x256xf32>,
    return
  }
  func.func @transform_0(%arg0: i32, %arg1: i32, %arg2: i32) -> (i32, i32, i32) {
    %c1_i32 = arith.constant 1 : i32
    %0 = arith.muli %arg0, %c1_i32 : i32
    %1 = arith.addi %0, %arg2 : i32
    %c0_i32 = arith.constant 0 : i32
    %2 = arith.minsi %1, %c0_i32 : i32
    %c0_i32_0 = arith.constant 0 : i32
    %c0_i32_1 = arith.constant 0 : i32
    return %arg1, %c0_i32_0, %2 : i32, i32, i32
  }
  func.func @transform_1(%arg0: i32, %arg1: i32, %arg2: i32) -> (i32, i32) {
    %c1_i32 = arith.constant 1 : i32
    %0 = arith.muli %arg0, %c1_i32 : i32
    %1 = arith.addi %0, %arg2 : i32
    %c0_i32 = arith.constant 0 : i32
    %2 = arith.minsi %1, %c0_i32 : i32
    %c0_i32_0 = arith.constant 0 : i32
    return %arg1, %2 : i32, i32
  }
  func.func @transform_2(%arg0: i32, %arg1: i32, %arg2: i32) -> (i32, i32, i32) {
    %c0_i32 = arith.constant 0 : i32
    %c0_i32_0 = arith.constant 0 : i32
    %c0_i32_1 = arith.constant 0 : i32
    return %arg0, %c0_i32, %c0_i32_0 : i32, i32, i32
  }
}

</mosaic_0001>

<bundles_post_ra>
// kernel: tpu_custom_call.1
= control target key start
LH: loop header
LB: loop body
LE: loop exit
PB: predicated region body
PF: predicated region fallthrough
CT: control target
= control target key end

     0   :  { %7 = vsyncpa [#allocation3], 0  ;;  %s600_s0 = inlined_call_operand.hbm [shape: f32[2,4,256], index: 0, kind: input, shape index: {}]   ;;  %s601_s1 = inlined_call_operand.hbm [shape: s32[2,256], index: 1, kind: input, shape index: {}]   ;;  %s602_s2 = inlined_call_operand.hbm [shape: f32[1,1,256], index: 2, kind: output, shape index: {}]  }
   0x1   :  { %8 = vsyncpa [#allocation6], 0 }
   0x2   :  { %9 = vsyncpa [#allocation4], 0  ;;  %s422_s9 = smov [#allocation2]   ;;  %s350_s13 = scalar_lea.hbm %s600_s0, 256 }
   0x3   :  { %s21_s10 = sshll.u32 %s422_s9, 4  ;;  %p351_p0 = scmp.ne.s32.totalorder %s600_s0, %s350_s13  ;;  %s22_s10 = int_to_ptr.vmem [resolvable:$true] %s21_s10 }
   0x4   :  { %p354_p1 = scmp.lt.u32.totalorder %s350_s13, %s600_s0 }
   0x6   :  { %p356_p2 = pnand %p354_p1, %p351_p0 }
   0x8   :  { %359 = shalt.err (!%p356_p2)
}
   0x9   :  { %s360_s18 = scalar_lea.vmem %s22_s10, 256  ;;  %p365_p4 = scmp.lt.s32.totalorder %s22_s10, %s22_s10 }
   0xa   :  { %p361_p3 = scmp.ne.s32.totalorder %s22_s10, %s360_s18  ;;  %p366_p5 = scmp.lt.s32.totalorder %s360_s18, %s360_s18 }
   0xc   :  { %p367_p6 = por %p366_p5, %p365_p4 }
   0xe   :  { %p368_p7 = pnand %p367_p6, %p361_p3 }
  0x10   :  { %371 = shalt.err (!%p368_p7)
}
  0x11   :  { %s423_s19 = smov 128   ;;  %s424_s20 = smov 8  }
  0x12   :  { %27 = dma.hbm_to_vmem [thread:$0]  %s600_s0, 256, %s22_s10, [#allocation3], %s423_s19, %s423_s19, %s424_s20  }
  0x13   :  { %s425_s23 = smov [#allocation5]   ;;  %s372_s27 = scalar_lea.hbm %s601_s1, 64 }
  0x14   :  { %s40_s24 = sshll.u32 %s425_s23, 4  ;;  %p373_p8 = scmp.ne.s32.totalorder %s601_s1, %s372_s27  ;;  %s41_s24 = int_to_ptr.vmem [resolvable:$true] %s40_s24 }
  0x15   :  { %p376_p9 = scmp.lt.u32.totalorder %s372_s27, %s601_s1 }
  0x17   :  { %p378_p10 = pnand %p376_p9, %p373_p8 }
  0x19   :  { %381 = shalt.err (!%p378_p10)
}
  0x1a   :  { %s382_s4 = scalar_lea.vmem %s41_s24, 64  ;;  %p387_p12 = scmp.lt.s32.totalorder %s41_s24, %s41_s24 }
  0x1b   :  { %p383_p11 = scmp.ne.s32.totalorder %s41_s24, %s382_s4  ;;  %p388_p13 = scmp.lt.s32.totalorder %s382_s4, %s382_s4 }
  0x1d   :  { %p389_p0 = por %p388_p13, %p387_p12 }
  0x1f   :  { %p390_p1 = pnand %p389_p0, %p383_p11 }
  0x21   :  { %393 = shalt.err (!%p390_p1)
}
  0x22   :  { %43 = dma.hbm_to_vmem [thread:$0]  %s601_s1, 64, %s41_s24, [#allocation6]  }
  0x23   :  { %416 = dma.done.wait [#allocation3], 256  }
  0x24   :  { %417 = vsyncadd [#allocation3], 4294967040 }
  0x25   :  { %418 = dma.done.wait [#allocation6], 64  }
  0x26   :  { %419 = vsyncadd [#allocation6], 4294967232  ;;  %v64_v0 = vlaneseq  ;;  %v426_v2 = vmov 0.0   ;;  %vm86_vm1 = vcmask 1043456   ;;  %v475_v3 = vld [vmem:[#allocation2] sm:$0xff]  ;;  %v477_v4 = vld [vmem:[#allocation2 + $0x8] sm:$0xff] }
  0x27   :  { %v481_v5 = vcombine.high %v475_v3, %v475_v3  ;;  %v485_v6 = vcombine.high %v477_v4, %v477_v4  ;;  %v87_v7 = vsel %vm86_vm1, %v475_v3, -inf  ;;  %v101_v9 = vsel %vm86_vm1, %v477_v4, -inf  ;;  %v509_v38 = vld.sshfl [vmem:[#allocation5] sm:$0x33 pattern:$0x75316420] }
  0x28   :  { %vm469_vm0 = vcmp.lt.s32.totalorder %v64_v0, 256  ;;  %v88_v8 = vrot.slane %v87_v7, 4  ;;  %v102_v11 = vrot.slane %v101_v9, 4  ;;  %v503_v35 = vshrl.u32 %v64_v0, 7  ;;  %s429_s1 = smov [#allocation7]  }
  0x29   :  { %68 = vst.msk [vmem:[#allocation7] sm:$0x3] %vm469_vm0, %v426_v2  ;;  %v94_v10 = vsel %vm86_vm1, %v481_v5, -inf  ;;  %v108_v12 = vsel %vm86_vm1, %v485_v6, -inf  ;;  %v518_v44 = vcombine.high %v509_v38, %v509_v38  ;;  %vm239_vm6 = vcmp.ne.s32.totalorder %v509_v38, 255  ;;  %s313_s6 = sshll.u32 %s429_s1, 4  ;;  %s314_s6 = int_to_ptr.vmem [resolvable:$true] %s313_s6 }
  0x2a   :  { %v89_v13 = vmax.f32 %v87_v7, %v88_v8  ;;  %v95_v14 = vrot.slane %v94_v10, 4  ;;  %v109_v15 = vrot.slane %v108_v12, 4  ;;  %v103_v16 = vmax.f32 %v101_v9, %v102_v11  ;;  %s394_s7 = scalar_lea.vmem %s314_s6, 32  ;;  %p399_p3 = scmp.lt.s32.totalorder %s314_s6, %s314_s6 }
  0x2b   :  { %v514_v43 = vsub.s32 0, %v503_v35  ;;  %v521_v45 = vsub.s32 1, %v503_v35  ;;  %vm240_vm7 = vcmp.ne.s32.totalorder %v518_v44, 255  ;;  %vm276_vm10 = vcmask 1040384   ;;  %p395_p2 = scmp.ne.s32.totalorder %s314_s6, %s394_s7  ;;  %p400_p4 = scmp.lt.s32.totalorder %s394_s7, %s394_s7 }
  0x2c   :  { %v90_v17 = vrot.slane %v89_v13, 2  ;;  %v96_v18 = vmax.f32 %v94_v10, %v95_v14  ;;  %v110_v19 = vmax.f32 %v108_v12, %v109_v15  ;;  %v104_v20 = vrot.slane %v103_v16, 2 }
  0x2d   :  { %v180_v46 = vrot.slane %v509_v38, %v514_v43  ;;  %v188_v47 = vrot.slane %v518_v44, %v514_v43  ;;  %v184_v48 = vrot.slane %v509_v38, %v521_v45  ;;  %v192_v49 = vrot.slane %v518_v44, %v521_v45  ;;  %p401_p5 = por %p400_p4, %p399_p3 }
  0x2e   :  { %v91_v21 = vmax.f32 %v89_v13, %v90_v17  ;;  %v97_v22 = vrot.slane %v96_v18, 2  ;;  %v111_v23 = vrot.slane %v110_v19, 2  ;;  %v105_v24 = vmax.f32 %v103_v16, %v104_v20 }
  0x2f   :  { %vm532_vm2 = vcmp.eq.s32.totalorder %v503_v35, %v180_v46  ;;  %vm537_vm3 = vcmp.eq.s32.totalorder %v503_v35, %v188_v47  ;;  %vm542_vm4 = vcmp.eq.s32.totalorder %v503_v35, %v184_v48  ;;  %vm547_vm5 = vcmp.eq.s32.totalorder %v503_v35, %v192_v49  ;;  %p402_p6 = pnand %p401_p5, %p395_p2 }
  0x30   :  { %v92_v25 = vrot.slane %v91_v21, 1  ;;  %v98_v26 = vmax.f32 %v96_v18, %v97_v22  ;;  %v112_v27 = vmax.f32 %v110_v19, %v111_v23  ;;  %v106_v28 = vrot.slane %v105_v24, 1 }
  0x31   :  { %v197_v54 = vsel %vm532_vm2, %v475_v3, 0.0  ;;  %v199_v56 = vsel %vm537_vm3, %v477_v4, 0.0  ;;  %v198_v60 = vsel %vm542_vm4, %v481_v5, 0.0  ;;  %v200_v61 = vsel %vm547_vm5, %v485_v6, 0.0 }
  0x32   :  { %v495_v29 = vmax.f32 %v91_v21, %v92_v25  ;;  %v99_v30 = vrot.slane %v98_v26, 1  ;;  %v113_v31 = vrot.slane %v112_v27, 1  ;;  %v497_v32 = vmax.f32 %v105_v24, %v106_v28 }
  0x33   :  { %v201_v2 = vsel %vm86_vm1, %v197_v54, 0.0  ;;  %v215_v7 = vsel %vm86_vm1, %v199_v56, 0.0  ;;  %v208_v5 = vsel %vm86_vm1, %v198_v60, 0.0  ;;  %v222_v13 = vsel %vm86_vm1, %v200_v61, 0.0 }
  0x34   :  { %v499_v33 = vmax.f32 %v98_v26, %v99_v30  ;;  %v501_v34 = vmax.f32 %v112_v27, %v113_v31  ;;  %v202_v6 = vrot.slane %v201_v2, 4  ;;  %v216_v16 = vrot.slane %v215_v7, 4 }
  0x35   :  { %v209_v19 = vrot.slane %v208_v5, 4  ;;  %v223_v22 = vrot.slane %v222_v13, 4 }
  0x36   :  { %v119_v36 = vcombine.low %v495_v29, %v499_v33  ;;  %v120_v37 = vcombine.low %v497_v32, %v501_v34  ;;  %v203_v25 = vadd.f32 %v202_v6, %v201_v2  ;;  %v217_v28 = vadd.f32 %v216_v16, %v215_v7 }
  0x38   :  { %v123_v39 = vsub.f32 %v475_v3, %v119_v36  ;;  %v124_v40 = vsub.f32 %v477_v4, %v120_v37  ;;  %v210_v36 = vadd.f32 %v209_v19, %v208_v5  ;;  %v204_v46 = vrot.slane %v203_v25, 2 }
  0x39   :  { %v218_v48 = vrot.slane %v217_v28, 2 }
  0x3a   :  { %v125_v41 = vmul.f32 1.442695, %v123_v39  ;;  %v127_v42 = vmul.f32 1.442695, %v124_v40  ;;  %v224_v40 = vadd.f32 %v223_v22, %v222_v13  ;;  %v211_v50 = vrot.slane %v210_v36, 2 }
  0x3b   :  { %v205_v52 = vadd.f32 %v204_v46, %v203_v25  ;;  %v219_v53 = vadd.f32 %v218_v48, %v217_v28 }
  0x3c   :  { %338 = vpow2.f32 %v125_v41  ;;  %v225_v51 = vrot.slane %v224_v40, 2  ;;  %v212_v54 = vadd.f32 %v211_v50, %v210_v36 }
  0x3d   :  { %340 = vpow2.f32 %v127_v42  ;;  %v206_v56 = vrot.slane %v205_v52, 1 }
  0x3e   :  { %v213_v61 = vrot.slane %v212_v54, 1 }
  0x40   :  { %v214_v13 = vadd.f32 %v213_v61, %v212_v54 }
  0x46   :  { %v339_v55 = vpop.eup %338 }
  0x47   :  { %v341_v57 = vpop.eup %340  ;;  %v131_v58 = vcombine.high %v339_v55, %v339_v55  ;;  %v135_v59 = vsel %vm86_vm1, %v339_v55, 0.0  ;;  %v226_v55 = vadd.f32 %v225_v51, %v224_v40 }
  0x48   :  { %v132_v62 = vcombine.high %v341_v57, %v341_v57  ;;  %v136_v63 = vrot.slane %v135_v59, 4  ;;  %v149_v0 = vsel %vm86_vm1, %v341_v57, 0.0  ;;  %v427_v57 = vmov 0  }
  0x49   :  { %v142_v3 = vsel %vm86_vm1, %v131_v58, 0.0  ;;  %v150_v4 = vrot.slane %v149_v0, 4  ;;  %v241_v58 = vsel %vm239_vm6, 1, %v427_v57  ;;  %v242_v60 = vsel %vm240_vm7, 1, %v427_v57 }
  0x4a   :  { %v137_v8 = vadd.f32 %v136_v63, %v135_v59  ;;  %v143_v9 = vrot.slane %v142_v3, 4  ;;  %v156_v10 = vsel %vm86_vm1, %v132_v62, 0.0  ;;  %v220_v59 = vrot.slane %v219_v53, 1 }
  0x4b   :  { %v151_v11 = vadd.f32 %v150_v4, %v149_v0  ;;  %v157_v12 = vrot.slane %v156_v10, 4  ;;  %v227_v63 = vrot.slane %v226_v55, 1  ;;  %v246_v0 = vrot.slane %v241_v58, %v514_v43 }
  0x4c   :  { %v138_v14 = vrot.slane %v137_v8, 2  ;;  %v144_v15 = vadd.f32 %v143_v9, %v142_v3  ;;  %v207_v4 = vadd.f32 %v206_v56, %v205_v52  ;;  %v254_v7 = vrot.slane %v242_v60, %v514_v43 }
  0x4d   :  { %v152_v17 = vrot.slane %v151_v11, 2  ;;  %v158_v18 = vadd.f32 %v157_v12, %v156_v10  ;;  %v221_v9 = vadd.f32 %v220_v59, %v219_v53  ;;  %v250_v44 = vrot.slane %v241_v58, %v521_v45 }
  0x4e   :  { %v139_v20 = vadd.f32 %v138_v14, %v137_v8  ;;  %v145_v21 = vrot.slane %v144_v15, 2  ;;  %v428_v10 = vmov 1966171168   ;;  %v258_v14 = vrot.slane %v242_v60, %v521_v45 }
  0x4f   :  { %v153_v23 = vadd.f32 %v152_v17, %v151_v11  ;;  %v159_v24 = vrot.slane %v158_v18, 2  ;;  %v287_v5 = vunpack.c.l.s4 %v428_v10  ;;  %v228_v17 = vadd.f32 %v227_v63, %v226_v55 }
  0x50   :  { %v140_v26 = vrot.slane %v139_v20, 1  ;;  %v146_v27 = vadd.f32 %v145_v21, %v144_v15  ;;  %vm259_vm8 = vcmp.ne.s32.totalorder %v246_v0, 0  ;;  %vm261_vm9 = vcmp.ne.s32.totalorder %v254_v7, 0 }
  0x51   :  { %v154_v30 = vrot.slane %v153_v23, 1  ;;  %v160_v31 = vadd.f32 %v159_v24, %v158_v18  ;;  %vm260_vm11 = vcmp.ne.s32.totalorder %v250_v44, 0  ;;  %vm262_vm12 = vcmp.ne.s32.totalorder %v258_v14, 0 }
  0x52   :  { %v141_v37 = vadd.f32 %v140_v26, %v139_v20  ;;  %v147_v39 = vrot.slane %v146_v27, 1  ;;  %v288_v24 = vunpack.c.0.s8 %v287_v5 }
  0x53   :  { %v155_v41 = vadd.f32 %v154_v30, %v153_v23  ;;  %v161_v42 = vrot.slane %v160_v31, 1 }
  0x54   :  { %v148_v47 = vadd.f32 %v147_v39, %v146_v27  ;;  %342 = vlog2.f32 %v141_v37  ;;  %v291_v30 = vsub.s32 %v288_v24, %v503_v35  ;;  %v275_v37 = vld [vmem:[#allocation7] sm:$0x3] }
  0x55   :  { %v162_v49 = vadd.f32 %v161_v42, %v160_v31  ;;  %344 = vlog2.f32 %v155_v41 }
  0x56   :  { %346 = vlog2.f32 %v148_v47 }
  0x57   :  { %348 = vlog2.f32 %v162_v49 }
  0x5e   :  { %v343_v62 = vpop.eup %342 }
  0x5f   :  { %v345_v2 = vpop.eup %344  ;;  %v164_v3 = vmul.f32 0.6931472, %v343_v62 }
  0x60   :  { %v347_v38 = vpop.eup %346  ;;  %v168_v8 = vmul.f32 0.6931472, %v345_v2 }
  0x61   :  { %v349_v11 = vpop.eup %348  ;;  %v166_v12 = vmul.f32 0.6931472, %v347_v38  ;;  %v171_v6 = vadd.f32 %v164_v3, %v495_v29 }
  0x62   :  { %v170_v15 = vmul.f32 0.6931472, %v349_v11  ;;  %v173_v16 = vadd.f32 %v168_v8, %v497_v32 }
  0x63   :  { %v172_v43 = vadd.f32 %v166_v12, %v499_v33  ;;  %v267_v18 = vsub.f32 %v171_v6, %v207_v4 }
  0x64   :  { %v174_v19 = vadd.f32 %v170_v15, %v501_v34  ;;  %v269_v20 = vsub.f32 %v173_v16, %v221_v9 }
  0x65   :  { %v268_v21 = vsub.f32 %v172_v43, %v214_v13  ;;  %v271_v29 = vsel %vm259_vm8, %v267_v18, 0.0 }
  0x66   :  { %v270_v22 = vsub.f32 %v174_v19, %v228_v17  ;;  %v273_v23 = vsel %vm261_vm9, %v269_v20, 0.0  ;;  %v277_v45 = vsel %vm276_vm10, %v271_v29, 0.0 }
  0x67   :  { %v272_v32 = vsel %vm260_vm11, %v268_v21, 0.0  ;;  %v278_v25 = vsel %vm276_vm10, %v273_v23, 0.0 }
  0x68   :  { %v274_v26 = vsel %vm262_vm12, %v270_v22, 0.0  ;;  %v279_v33 = vadd.f32 %v278_v25, %v277_v45  ;;  %v280_v27 = vsel %vm276_vm10, %v272_v32, 0.0 }
  0x69   :  { %v281_v28 = vsel %vm276_vm10, %v274_v26, 0.0 }
  0x6a   :  { %v282_v34 = vadd.f32 %v281_v28, %v280_v27 }
  0x6c   :  { %v285_v31 = vcombine.low %v279_v33, %v282_v34 }
  0x6e   :  { %v292_v36 = vrot.slane %v285_v31, %v291_v30 }
  0x70   :  { %v299_v39 = vrot.slane %v292_v36, %v291_v30 }
  0x72   :  { %v301_v40 = vadd.f32 %v299_v39, %v275_v37 }
  0x74   :  { %306 = vst.msk [vmem:[#allocation7] sm:$0x3] %vm469_vm0, %v301_v40 }
  0x75   :  { %405 = shalt.err (!%p402_p6)
}
  0x76   :  { %s406_s10 = scalar_lea.hbm %s602_s2, 32 }
  0x77   :  { %p407_p7 = scmp.ne.s32.totalorder %s602_s2, %s406_s10  ;;  %p410_p8 = scmp.lt.u32.totalorder %s406_s10, %s602_s2 }
  0x79   :  { %p412_p9 = pnand %p410_p8, %p407_p7 }
  0x7b   :  { %415 = shalt.err (!%p412_p9)
}
  0x7c   :  { %316 = dma.vmem_to_hbm [thread:$0]  %s314_s6, 32, %s602_s2, [#allocation4]  }
  0x7d   :  { %420 = dma.done.wait [#allocation4], 32  }
  0x7e   :  { %421 = vsyncadd [#allocation4], 4294967264 }
  0x7f   :  { %320 = vsyncpa [#allocation3], 1 }
  0x80   :  { %321 = vsyncpa [#allocation6], 1 }
  0x81   :  { %322 = vsyncpa [#allocation4], 1 }

</bundles_post_ra>
